<compile_context>
chip_gen: v7x
topology: tpu7x:2x2x1
jax: 0.10.0
libtpu: 0.0.40
codegen_flags: <defaults>
</compile_context>

<pallas_src>
import jax
import jax.numpy as jnp
from jax.experimental import pallas as pl
from jax.experimental.pallas import tpu as pltpu

INPUT_SIZE = 8
HIDDEN = 100           # real hidden size (PyTorch)
HP = 128               # padded hidden size (lane-aligned)
NUM_LAYERS = 2         # max_layers (h_0 / c_0 are (2, 1, 100) in the module)

_GATE_PERM = (0, 1, 3, 2)   # PyTorch gate order i|f|g|o  ->  kernel order i|f|o|g


def _policy_kernel(x_ref, wih0_ref, whh0_ref, b0_ref,
                   wcat1_hbm, b1_ref, wfc_hbm, bfc_ref,
                   h0_ref, c0_ref,
                   out_ref,
                   wcat1_vmem, wfc_vmem, dma_sem):
    """Single-program kernel: ~0.5 MiB of weights, everything fits in VMEM."""
    # Prefetch layer-1 / fc weights from HBM; overlap their DMA with layer-0 compute.
    cp_w1 = pltpu.make_async_copy(wcat1_hbm, wcat1_vmem, dma_sem.at[0])
    cp_fc = pltpu.make_async_copy(wfc_hbm, wfc_vmem, dma_sem.at[1])
    cp_w1.start()
    cp_fc.start()

    def gate_math(gates, c_prev):
        # gates: (1, 4*HP) f32 packed i|f|o|g. One sigmoid over the first 3*HP lanes,
        # one tanh over the last HP lanes (g is last so no wasted EUP push).
        sig = jax.nn.sigmoid(gates[:, :3 * HP])
        i = sig[:, 0 * HP:1 * HP]
        f = sig[:, 1 * HP:2 * HP]
        o = sig[:, 2 * HP:3 * HP]
        g = jnp.tanh(gates[:, 3 * HP:])
        c_new = f * c_prev + i * g
        h_new = o * jnp.tanh(c_new)
        return h_new, c_new

    # ---- layer 0 ----
    # Input contribution: only 8 real features -> VPU column-broadcast multiply +
    # sublane reduce against a small exact-f32 (8, 512) weight (no zero-row DMA, no MXU).
    x_col = x_ref[...]                                            # (8, 1)  f32
    gx = jnp.sum(x_col * wih0_ref[...], axis=0, keepdims=True)    # (1, 512) f32
    # Hidden contribution: one (1,128) x (128,512) bf16 MXU pass, f32 accumulation.
    gh = jnp.dot(h0_ref[0:1, :].astype(jnp.bfloat16), whh0_ref[...],
                 preferred_element_type=jnp.float32)              # (1, 512) f32
    gates0 = gx + gh + b0_ref[...]
    h_l0, _ = gate_math(gates0, c0_ref[0:1, :])

    # ---- layer 1: fused [h_l0 | h0_l1] (1, 256) bf16 x (256, 512) bf16 ----
    cp_w1.wait()
    xcat = jnp.concatenate([h_l0.astype(jnp.bfloat16),
                            h0_ref[1:2, :].astype(jnp.bfloat16)], axis=-1)
    gates1 = jnp.dot(xcat, wcat1_vmem[...],
                     preferred_element_type=jnp.float32) + b1_ref[...]
    h_l1, _ = gate_math(gates1, c0_ref[1:2, :])

    # ---- fc (100 -> 8, padded to 128x128 for a lane-dense unmasked store) + sigmoid ----
    cp_fc.wait()
    logits = jnp.dot(h_l1.astype(jnp.bfloat16), wfc_vmem[...],
                     preferred_element_type=jnp.float32) + bfc_ref[...]
    out_ref[...] = jax.nn.sigmoid(logits)


def policy_network_forward(new_state, params):
    """new_state: (1, 8) float32 -> (1, 1, 8) float32 (matches PyTorch output)."""
    x_col = new_state.reshape(INPUT_SIZE, 1)   # column layout for the VPU input path

    vmem = pl.BlockSpec(memory_space=pltpu.MemorySpace.VMEM)
    hbm = pl.BlockSpec(memory_space=pl.ANY)

    out = pl.pallas_call(
        _policy_kernel,
        out_shape=jax.ShapeDtypeStruct((1, HP), jnp.float32),
        in_specs=[vmem,   # x            (8, 1)    f32
                  vmem,   # wih0_t       (8, 512)  f32  (exact, tiny)
                  vmem,   # whh0_t       (128, 512) bf16
                  vmem,   # b0           (1, 512)  f32
                  hbm,    # wcat1        (256, 512) bf16  (manual DMA, overlapped)
                  vmem,   # b1           (1, 512)  f32
                  hbm,    # wfc          (128, 128) bf16  (manual DMA, overlapped)
                  vmem,   # bfc          (1, 128)  f32
                  vmem,   # h0           (2, 128)  f32
                  vmem],  # c0           (2, 128)  f32
        out_specs=vmem,
        scratch_shapes=[pltpu.VMEM((2 * HP, 4 * HP), jnp.bfloat16),   # wcat1 landing
                        pltpu.VMEM((HP, HP), jnp.bfloat16),           # wfc landing
                        pltpu.SemaphoreType.DMA((2,))],
    )(x_col,
      params["wih0"], params["whh0"], params["b0"],
      params["wcat1"], params["b1"],
      params["wfc"], params["bfc"],
      params["h0"], params["c0"])

    # output[:, -1:, :] of a (seq=1, batch=1) LSTM -> fc -> sigmoid -> (1, 1, 8)
    return out[:, :INPUT_SIZE].reshape(1, 1, INPUT_SIZE)


def _pad_gate_axis(w):
    """(4*HIDDEN, ...) in PyTorch order i|f|g|o -> (4*HP, ...) in kernel order i|f|o|g,
    each gate's 100-block zero-padded to 128."""
    w4 = w.reshape(4, HIDDEN, *w.shape[1:])[jnp.array(_GATE_PERM)]
    pad = [(0, 0), (0, HP - HIDDEN)] + [(0, 0)] * (w.ndim - 1)
    return jnp.pad(w4, pad).reshape(4 * HP, *w.shape[1:])


def init_params(key):
    """Deterministic synthetic init matching the PyTorch module's parameter shapes.

    LSTM / Linear params: uniform(-1/sqrt(HIDDEN), 1/sqrt(HIDDEN)) (PyTorch default).
    h_0 / c_0: standard normal (torch.randn in __init__).
    Returns (kernel_params, raw_params); raw_params drive the pure-JAX f32 reference.
    """
    ks = jax.random.split(key, 12)
    bound = 1.0 / (HIDDEN ** 0.5)
    u = lambda k, shape: jax.random.uniform(k, shape, jnp.float32, -bound, bound)

    raw = {
        "wih0": u(ks[0], (4 * HIDDEN, INPUT_SIZE)),   # weight_ih_l0 (400, 8)
        "whh0": u(ks[1], (4 * HIDDEN, HIDDEN)),       # weight_hh_l0 (400, 100)
        "bih0": u(ks[2], (4 * HIDDEN,)),
        "bhh0": u(ks[3], (4 * HIDDEN,)),
        "wih1": u(ks[4], (4 * HIDDEN, HIDDEN)),       # weight_ih_l1 (400, 100)
        "whh1": u(ks[5], (4 * HIDDEN, HIDDEN)),       # weight_hh_l1 (400, 100)
        "bih1": u(ks[6], (4 * HIDDEN,)),
        "bhh1": u(ks[7], (4 * HIDDEN,)),
        "wfc": u(ks[8], (INPUT_SIZE, HIDDEN)),        # fc.weight (8, 100)
        "bfc": u(ks[9], (INPUT_SIZE,)),               # fc.bias (8,)
        "h0": jax.random.normal(ks[10], (NUM_LAYERS, 1, HIDDEN), jnp.float32),
        "c0": jax.random.normal(ks[11], (NUM_LAYERS, 1, HIDDEN), jnp.float32),
    }

    # ---- layer 0: input weight stays a small exact-f32 tile; hidden weight bf16 ----
    wih0_t = _pad_gate_axis(raw["wih0"]).T                        # (8, 512) f32
    whh0_t = jnp.pad(_pad_gate_axis(raw["whh0"]).T,
                     ((0, HP - HIDDEN), (0, 0))).astype(jnp.bfloat16)   # (128, 512)
    b0 = _pad_gate_axis(raw["bih0"] + raw["bhh0"]).reshape(1, 4 * HP)   # (1, 512) f32

    # ---- layer 1: fused [wih1_t ; whh1_t] -> (256, 512) bf16 ----
    wih1_t = jnp.pad(_pad_gate_axis(raw["wih1"]).T, ((0, HP - HIDDEN), (0, 0)))
    whh1_t = jnp.pad(_pad_gate_axis(raw["whh1"]).T, ((0, HP - HIDDEN), (0, 0)))
    wcat1 = jnp.concatenate([wih1_t, whh1_t], axis=0).astype(jnp.bfloat16)
    b1 = _pad_gate_axis(raw["bih1"] + raw["bhh1"]).reshape(1, 4 * HP)   # (1, 512) f32

    # ---- fc: (100, 8) -> padded (128, 128) bf16, lane-dense output ----
    wfc_t = jnp.pad(raw["wfc"].T,
                    ((0, HP - HIDDEN), (0, HP - INPUT_SIZE))).astype(jnp.bfloat16)
    bfc_p = jnp.pad(raw["bfc"], (0, HP - INPUT_SIZE)).reshape(1, HP)    # (1, 128) f32

    # ---- fixed initial state, padded lanes zero ----
    h0_p = jnp.pad(raw["h0"].reshape(NUM_LAYERS, HIDDEN), ((0, 0), (0, HP - HIDDEN)))
    c0_p = jnp.pad(raw["c0"].reshape(NUM_LAYERS, HIDDEN), ((0, 0), (0, HP - HIDDEN)))

    # Padded-lane inertness invariants (sigmoid(0)*0 + sigmoid(0)*tanh(0) == 0 downstream).
    assert bool(jnp.all(h0_p[:, HIDDEN:] == 0)) and bool(jnp.all(c0_p[:, HIDDEN:] == 0))
    assert bool(jnp.all(b0.reshape(4, HP)[:, HIDDEN:] == 0))
    assert bool(jnp.all(b1.reshape(4, HP)[:, HIDDEN:] == 0))
    assert bool(jnp.all(bfc_p[:, INPUT_SIZE:] == 0))

    params = {
        "wih0": wih0_t,   # (8, 512)   f32
        "whh0": whh0_t,   # (128, 512) bf16
        "b0": b0,         # (1, 512)   f32
        "wcat1": wcat1,   # (256, 512) bf16
        "b1": b1,         # (1, 512)   f32
        "wfc": wfc_t,     # (128, 128) bf16
        "bfc": bfc_p,     # (1, 128)   f32
        "h0": h0_p,       # (2, 128)   f32
        "c0": c0_p,       # (2, 128)   f32
    }
    return params, raw


def policy_network_reference(new_state, raw):
    """Pure-JAX f32 reference of the PyTorch module (gate order i|f|g|o)."""
    x = new_state[0]
    inp = x
    for layer in range(NUM_LAYERS):
        wih, whh = raw[f"wih{layer}"], raw[f"whh{layer}"]
        bih, bhh = raw[f"bih{layer}"], raw[f"bhh{layer}"]
        h_prev = raw["h0"][layer, 0]
        c_prev = raw["c0"][layer, 0]
        gates = wih @ inp + whh @ h_prev + bih + bhh
        i, f, g, o = jnp.split(gates, 4)
        i, f, o = jax.nn.sigmoid(i), jax.nn.sigmoid(f), jax.nn.sigmoid(o)
        g = jnp.tanh(g)
        c_new = f * c_prev + i * g
        inp = o * jnp.tanh(c_new)
    out = jax.nn.sigmoid(raw["wfc"] @ inp + raw["bfc"])
    return out.reshape(1, 1, INPUT_SIZE)


if __name__ == "__main__":
    key = jax.random.PRNGKey(0)
    pkey, xkey = jax.random.split(key)
    params, raw = init_params(pkey)
    # new_state: (batch=1, features=8); LSTM batch must be 1 to match h_0 (2, 1, 100)
    new_state = jax.random.normal(xkey, (1, INPUT_SIZE), jnp.float32)

    out = jax.block_until_ready(policy_network_forward(new_state, params))
    ref = jax.block_until_ready(policy_network_reference(new_state, raw))

    assert out.shape == (1, 1, INPUT_SIZE)
    assert bool(jnp.all((out >= 0.0) & (out <= 1.0)))          # sigmoid range sanity
    assert bool(jnp.all(jnp.abs(out - ref) < 5e-2)), (out, ref)  # bf16-MXU tolerance
    print("KERNEL_OK")
</pallas_src>

<mosaic_0001>
module attributes {stable_mosaic.version = 11 : i64} {
  func.func @_policy_kernel(%arg0: memref<8x1xf32, #tpu.memory_space<vmem>>, %arg1: memref<8x512xf32, #tpu.memory_space<vmem>>, %arg2: memref<128x512xbf16, #tpu.memory_space<vmem>>, %arg3: memref<1x512xf32, #tpu.memory_space<vmem>>, %arg4: memref<256x512xbf16, #tpu.memory_space<any>>, %arg5: memref<1x512xf32, #tpu.memory_space<vmem>>, %arg6: memref<128x128xbf16, #tpu.memory_space<any>>, %arg7: memref<1x128xf32, #tpu.memory_space<vmem>>, %arg8: memref<2x128xf32, #tpu.memory_space<vmem>>, %arg9: memref<2x128xf32, #tpu.memory_space<vmem>>, %arg10: memref<1x128xf32, #tpu.memory_space<vmem>>, %arg11: memref<256x512xbf16, #tpu.memory_space<vmem>>, %arg12: memref<128x128xbf16, #tpu.memory_space<vmem>>, %arg13: memref<2x!tpu.dma_semaphore, #tpu.memory_space<semaphore_mem>>) attributes {dimension_semantics = [], scalar_prefetch = 0 : i64, scratch_operands = 3 : i64, tpu.core_type = #tpu.core_type<tc>} {
    %c0_i32 = arith.constant 0 : i32
    %0 = tpu.memref_slice %arg13[%c0_i32] : memref<2x!tpu.dma_semaphore, #tpu.memory_space<semaphore_mem>> -> memref<1x!tpu.dma_semaphore, #tpu.memory_space<semaphore_mem>>
    %1 = tpu.memref_squeeze %0 : memref<1x!tpu.dma_semaphore, #tpu.memory_space<semaphore_mem>> -> memref<!tpu.dma_semaphore, #tpu.memory_space<semaphore_mem>>
    tpu.enqueue_dma source(%arg4 : memref<256x512xbf16, #tpu.memory_space<any>>) target(%arg11 : memref<256x512xbf16, #tpu.memory_space<vmem>>) target_semaphore(%1 : memref<!tpu.dma_semaphore, #tpu.memory_space<semaphore_mem>>)
    %c1_i32 = arith.constant 1 : i32
    %2 = tpu.memref_slice %arg13[%c1_i32] : memref<2x!tpu.dma_semaphore, #tpu.memory_space<semaphore_mem>> -> memref<1x!tpu.dma_semaphore, #tpu.memory_space<semaphore_mem>>
    %3 = tpu.memref_squeeze %2 : memref<1x!tpu.dma_semaphore, #tpu.memory_space<semaphore_mem>> -> memref<!tpu.dma_semaphore, #tpu.memory_space<semaphore_mem>>
    tpu.enqueue_dma source(%arg6 : memref<128x128xbf16, #tpu.memory_space<any>>) target(%arg12 : memref<128x128xbf16, #tpu.memory_space<vmem>>) target_semaphore(%3 : memref<!tpu.dma_semaphore, #tpu.memory_space<semaphore_mem>>)
    %c0 = arith.constant 0 : index
    %c0_0 = arith.constant 0 : index
    %4 = vector.load %arg0[%c0, %c0_0] : memref<8x1xf32, #tpu.memory_space<vmem>>, vector<8x1xf32>
    %c0_1 = arith.constant 0 : index
    %c0_2 = arith.constant 0 : index
    %5 = vector.load %arg1[%c0_1, %c0_2] : memref<8x512xf32, #tpu.memory_space<vmem>>, vector<8x512xf32>
    %6 = vector.broadcast %4 : vector<8x1xf32> to vector<8x512xf32>
    %7 = arith.mulf %6, %5 : vector<8x512xf32>
    %cst = arith.constant dense<0.000000e+00> : vector<512xf32>
    %8 = vector.multi_reduction <add>, %7, %cst [0] : vector<8x512xf32> to vector<512xf32>
    %9 = vector.shape_cast %8 : vector<512xf32> to vector<1x512xf32>
    %c0_3 = arith.constant 0 : index
    %c0_4 = arith.constant 0 : index
    %10 = vector.load %arg8[%c0_3, %c0_4] : memref<2x128xf32, #tpu.memory_space<vmem>>, vector<1x128xf32>
    %11 = arith.truncf %10 : vector<1x128xf32> to vector<1x128xbf16>
    %c0_5 = arith.constant 0 : index
    %c0_6 = arith.constant 0 : index
    %12 = vector.load %arg2[%c0_5, %c0_6] : memref<128x512xbf16, #tpu.memory_space<vmem>>, vector<128x512xbf16>
    %cst_7 = arith.constant dense<0.000000e+00> : vector<1x512xf32>
    %13 = tpu.matmul %11, %12, %cst_7 {dimension_numbers = #tpu.dot_dimension_numbers<[1], [0], [0], [1], [0, 0, 1, 1], [], []>} : vector<1x128xbf16>, vector<128x512xbf16>, vector<1x512xf32> -> vector<1x512xf32>
    %14 = arith.addf %9, %13 : vector<1x512xf32>
    %c0_8 = arith.constant 0 : index
    %c0_9 = arith.constant 0 : index
    %15 = vector.load %arg3[%c0_8, %c0_9] : memref<1x512xf32, #tpu.memory_space<vmem>>, vector<1x512xf32>
    %16 = arith.addf %14, %15 : vector<1x512xf32>
    %c0_10 = arith.constant 0 : index
    %c0_11 = arith.constant 0 : index
    %17 = vector.load %arg9[%c0_10, %c0_11] : memref<2x128xf32, #tpu.memory_space<vmem>>, vector<1x128xf32>
    %18 = vector.extract_strided_slice %16 {offsets = [0, 0], sizes = [1, 384], strides = [1, 1]} : vector<1x512xf32> to vector<1x384xf32>
    %19 = arith.negf %18 : vector<1x384xf32>
    %20 = math.exp %19 : vector<1x384xf32>
    %cst_12 = arith.constant 1.000000e+00 : f32
    %21 = vector.broadcast %cst_12 : f32 to vector<1x384xf32>
    %22 = arith.addf %21, %20 : vector<1x384xf32>
    %23 = arith.divf %21, %22 : vector<1x384xf32>
    %24 = vector.extract_strided_slice %23 {offsets = [0, 0], sizes = [1, 128], strides = [1, 1]} : vector<1x384xf32> to vector<1x128xf32>
    %25 = vector.extract_strided_slice %23 {offsets = [0, 128], sizes = [1, 128], strides = [1, 1]} : vector<1x384xf32> to vector<1x128xf32>
    %26 = vector.extract_strided_slice %23 {offsets = [0, 256], sizes = [1, 128], strides = [1, 1]} : vector<1x384xf32> to vector<1x128xf32>
    %27 = vector.extract_strided_slice %16 {offsets = [0, 384], sizes = [1, 128], strides = [1, 1]} : vector<1x512xf32> to vector<1x128xf32>
    %28 = math.tanh %27 : vector<1x128xf32>
    %29 = arith.mulf %25, %17 : vector<1x128xf32>
    %30 = arith.mulf %24, %28 : vector<1x128xf32>
    %31 = arith.addf %29, %30 : vector<1x128xf32>
    %32 = math.tanh %31 : vector<1x128xf32>
    %33 = arith.mulf %26, %32 : vector<1x128xf32>
    %c0_i32_13 = arith.constant 0 : i32
    %34 = tpu.memref_slice %arg13[%c0_i32_13] : memref<2x!tpu.dma_semaphore, #tpu.memory_space<semaphore_mem>> -> memref<1x!tpu.dma_semaphore, #tpu.memory_space<semaphore_mem>>
    %35 = tpu.memref_squeeze %34 : memref<1x!tpu.dma_semaphore, #tpu.memory_space<semaphore_mem>> -> memref<!tpu.dma_semaphore, #tpu.memory_space<semaphore_mem>>
    tpu.wait_dma2 semaphore(%35 : memref<!tpu.dma_semaphore, #tpu.memory_space<semaphore_mem>>) src(%arg4 : memref<256x512xbf16, #tpu.memory_space<any>>) dst(%arg11 : memref<256x512xbf16, #tpu.memory_space<vmem>>)
    %36 = arith.truncf %33 : vector<1x128xf32> to vector<1x128xbf16>
    %c1 = arith.constant 1 : index
    %c0_14 = arith.constant 0 : index
    %37 = vector.load %arg8[%c1, %c0_14] : memref<2x128xf32, #tpu.memory_space<vmem>>, vector<1x128xf32>
    %38 = arith.truncf %37 : vector<1x128xf32> to vector<1x128xbf16>
    %39 = tpu.concatenate %36, %38 in 1 : vector<1x128xbf16>, vector<1x128xbf16> -> vector<1x256xbf16>
    %c0_15 = arith.constant 0 : index
    %c0_16 = arith.constant 0 : index
    %40 = vector.load %arg11[%c0_15, %c0_16] : memref<256x512xbf16, #tpu.memory_space<vmem>>, vector<256x512xbf16>
    %cst_17 = arith.constant dense<0.000000e+00> : vector<1x512xf32>
    %41 = tpu.matmul %39, %40, %cst_17 {dimension_numbers = #tpu.dot_dimension_numbers<[1], [0], [0], [1], [0, 0, 1, 1], [], []>} : vector<1x256xbf16>, vector<256x512xbf16>, vector<1x512xf32> -> vector<1x512xf32>
    %c0_18 = arith.constant 0 : index
    %c0_19 = arith.constant 0 : index
    %42 = vector.load %arg5[%c0_18, %c0_19] : memref<1x512xf32, #tpu.memory_space<vmem>>, vector<1x512xf32>
    %43 = arith.addf %41, %42 : vector<1x512xf32>
    %c1_20 = arith.constant 1 : index
    %c0_21 = arith.constant 0 : index
    %44 = vector.load %arg9[%c1_20, %c0_21] : memref<2x128xf32, #tpu.memory_space<vmem>>, vector<1x128xf32>
    %45 = vector.extract_strided_slice %43 {offsets = [0, 0], sizes = [1, 384], strides = [1, 1]} : vector<1x512xf32> to vector<1x384xf32>
    %46 = arith.negf %45 : vector<1x384xf32>
    %47 = math.exp %46 : vector<1x384xf32>
    %cst_22 = arith.constant 1.000000e+00 : f32
    %48 = vector.broadcast %cst_22 : f32 to vector<1x384xf32>
    %49 = arith.addf %48, %47 : vector<1x384xf32>
    %50 = arith.divf %48, %49 : vector<1x384xf32>
    %51 = vector.extract_strided_slice %50 {offsets = [0, 0], sizes = [1, 128], strides = [1, 1]} : vector<1x384xf32> to vector<1x128xf32>
    %52 = vector.extract_strided_slice %50 {offsets = [0, 128], sizes = [1, 128], strides = [1, 1]} : vector<1x384xf32> to vector<1x128xf32>
    %53 = vector.extract_strided_slice %50 {offsets = [0, 256], sizes = [1, 128], strides = [1, 1]} : vector<1x384xf32> to vector<1x128xf32>
    %54 = vector.extract_strided_slice %43 {offsets = [0, 384], sizes = [1, 128], strides = [1, 1]} : vector<1x512xf32> to vector<1x128xf32>
    %55 = math.tanh %54 : vector<1x128xf32>
    %56 = arith.mulf %52, %44 : vector<1x128xf32>
    %57 = arith.mulf %51, %55 : vector<1x128xf32>
    %58 = arith.addf %56, %57 : vector<1x128xf32>
    %59 = math.tanh %58 : vector<1x128xf32>
    %60 = arith.mulf %53, %59 : vector<1x128xf32>
    %c1_i32_23 = arith.constant 1 : i32
    %61 = tpu.memref_slice %arg13[%c1_i32_23] : memref<2x!tpu.dma_semaphore, #tpu.memory_space<semaphore_mem>> -> memref<1x!tpu.dma_semaphore, #tpu.memory_space<semaphore_mem>>
    %62 = tpu.memref_squeeze %61 : memref<1x!tpu.dma_semaphore, #tpu.memory_space<semaphore_mem>> -> memref<!tpu.dma_semaphore, #tpu.memory_space<semaphore_mem>>
    tpu.wait_dma2 semaphore(%62 : memref<!tpu.dma_semaphore, #tpu.memory_space<semaphore_mem>>) src(%arg6 : memref<128x128xbf16, #tpu.memory_space<any>>) dst(%arg12 : memref<128x128xbf16, #tpu.memory_space<vmem>>)
    %63 = arith.truncf %60 : vector<1x128xf32> to vector<1x128xbf16>
    %c0_24 = arith.constant 0 : index
    %c0_25 = arith.constant 0 : index
    %64 = vector.load %arg12[%c0_24, %c0_25] : memref<128x128xbf16, #tpu.memory_space<vmem>>, vector<128x128xbf16>
    %cst_26 = arith.constant dense<0.000000e+00> : vector<1x128xf32>
    %65 = tpu.matmul %63, %64, %cst_26 {dimension_numbers = #tpu.dot_dimension_numbers<[1], [0], [0], [1], [0, 0, 1, 1], [], []>} : vector<1x128xbf16>, vector<128x128xbf16>, vector<1x128xf32> -> vector<1x128xf32>
    %c0_27 = arith.constant 0 : index
    %c0_28 = arith.constant 0 : index
    %66 = vector.load %arg7[%c0_27, %c0_28] : memref<1x128xf32, #tpu.memory_space<vmem>>, vector<1x128xf32>
    %67 = arith.addf %65, %66 : vector<1x128xf32>
    %68 = arith.negf %67 : vector<1x128xf32>
    %69 = math.exp %68 : vector<1x128xf32>
    %cst_29 = arith.constant 1.000000e+00 : f32
    %70 = vector.broadcast %cst_29 : f32 to vector<1x128xf32>
    %71 = arith.addf %70, %69 : vector<1x128xf32>
    %72 = arith.divf %70, %71 : vector<1x128xf32>
    %c0_30 = arith.constant 0 : index
    %c0_31 = arith.constant 0 : index
    %73 = vector.load %arg10[%c0_30, %c0_31] : memref<1x128xf32, #tpu.memory_space<vmem>>, vector<1x128xf32>
    tpu.vector_store %arg10[%c0_30, %c0_31], %72 {strides = array<i32>} : memref<1x128xf32, #tpu.memory_space<vmem>>, vector<1x128xf32>,
    return
  }
}

</mosaic_0001>

<bundles_post_ra>
// kernel: tpu_custom_call.1
= control target key start
LH: loop header
LB: loop body
LE: loop exit
PB: predicated region body
PF: predicated region fallthrough
CT: control target
= control target key end

     0   :  { %15 = vsyncpa [#allocation6], 0  ;;  %s1217_s0 = inlined_call_operand.vmem [shape: f32[8,1], index: 0, kind: input, shape index: {}]   ;;  %s1218_s1 = inlined_call_operand.hbm [shape: f32[8,512], index: 1, kind: input, shape index: {}]   ;;  %s1219_s2 = inlined_call_operand.hbm [shape: bf16[128,512], index: 2, kind: input, shape index: {}]   ;;  %s1220_s3 = inlined_call_operand.vmem [shape: f32[1,512], index: 3, kind: input, shape index: {}]   ;;  %s1221_s4 = inlined_call_operand.hbm [shape: bf16[256,512], index: 4, kind: input, shape index: {}]   ;;  %s1222_s5 = inlined_call_operand.vmem [shape: f32[1,512], index: 5, kind: input, shape index: {}]   ;;  %s1223_s6 = inlined_call_operand.hbm [shape: bf16[128,128], index: 6, kind: input, shape index: {}]   ;;  %s1224_s7 = inlined_call_operand.vmem [shape: f32[1,128], index: 7, kind: input, shape index: {}]   ;;  %s1225_s8 = inlined_call_operand.vmem [shape: f32[2,128], index: 8, kind: input, shape index: {}]   ;;  %s1226_s9 = inlined_call_operand.vmem [shape: f32[2,128], index: 9, kind: input, shape index: {}]   ;;  %s1227_s10 = inlined_call_operand.hbm [shape: f32[1,128], index: 10, kind: output, shape index: {}]  }
   0x1   :  { %16 = vsyncpa [#allocation9], 0 }
   0x2   :  { %17 = vsyncpa [#allocation7], 0  ;;  %s1037_s13 = smov [#allocation5]   ;;  %s1038_s15 = smov [#allocation8]  }
   0x3   :  { %s26_s14 = sshll.u32 %s1037_s13, 4  ;;  %s35_s16 = sshll.u32 %s1038_s15, 4  ;;  %s27_s14 = int_to_ptr.vmem [resolvable:$true] %s26_s14  ;;  %s1109_s16 = int_to_ptr.vmem [resolvable:$true] %s35_s16 }
   0x4   :  { %s939_s19 = scalar_lea.hbm %s1218_s1, 512 }
   0x5   :  { %p940_p0 = scmp.ne.s32.totalorder %s1218_s1, %s939_s19  ;;  %p943_p1 = scmp.lt.u32.totalorder %s939_s19, %s1218_s1 }
   0x7   :  { %p945_p2 = pnand %p943_p1, %p940_p0 }
   0x9   :  { %948 = shalt.err (!%p945_p2)
}
   0xa   :  { %s949_s24 = scalar_lea.vmem %s27_s14, 512  ;;  %p954_p4 = scmp.lt.s32.totalorder %s27_s14, %s27_s14 }
   0xb   :  { %p950_p3 = scmp.ne.s32.totalorder %s27_s14, %s949_s24  ;;  %p955_p5 = scmp.lt.s32.totalorder %s949_s24, %s949_s24 }
   0xd   :  { %p956_p6 = por %p955_p5, %p954_p4 }
   0xf   :  { %p957_p7 = pnand %p956_p6, %p950_p3 }
  0x11   :  { %960 = shalt.err (!%p957_p7)
}
  0x12   :  { %29 = dma.hbm_to_vmem [thread:$0]  %s1218_s1, 512, %s27_s14, [#allocation6]  }
  0x13   :  { %s961_s29 = scalar_lea.hbm %s1219_s2, 4096 }
  0x14   :  { %p962_p8 = scmp.ne.s32.totalorder %s1219_s2, %s961_s29  ;;  %p965_p9 = scmp.lt.u32.totalorder %s961_s29, %s1219_s2 }
  0x16   :  { %p967_p10 = pnand %p965_p9, %p962_p8 }
  0x18   :  { %970 = shalt.err (!%p967_p10)
}
  0x19   :  { %s971_s15 = scalar_lea.vmem %s1109_s16, 4096  ;;  %p976_p12 = scmp.lt.s32.totalorder %s1109_s16, %s1109_s16 }
  0x1a   :  { %p972_p11 = scmp.ne.s32.totalorder %s1109_s16, %s971_s15  ;;  %p977_p13 = scmp.lt.s32.totalorder %s971_s15, %s971_s15 }
  0x1c   :  { %p978_p0 = por %p977_p13, %p976_p12 }
  0x1e   :  { %p979_p1 = pnand %p978_p0, %p972_p11 }
  0x20   :  { %982 = shalt.err (!%p979_p1)
}
  0x21   :  { %s1039_s1 = smov 256   ;;  %s1040_s14 = smov 16  }
  0x22   :  { %41 = dma.hbm_to_vmem [thread:$0]  %s1219_s2, 4096, %s1109_s16, [#allocation9], %s1039_s1, %s1039_s1, %s1040_s14  }
  0x23   :  { %1027 = dma.done.wait [#allocation6], 512  }
  0x24   :  { %1028 = vsyncadd [#allocation6], 4294966784 }
  0x25   :  { %1029 = dma.done.wait [#allocation9], 4096  }
  0x26   :  { %1030 = vsyncadd [#allocation9], 4294963200  ;;  %s63_s19 = sld [smem:[#allocation0]]   ;;  %s1041_s20 = smov 512   ;;  %v1042_v0 = vmov 0  }
  0x27   :  { %75 = sst [smem:[#allocation12]] %s1041_s20  ;;  %370 = vmatprep.mubr.bf16.mxu0 %v1042_v0  ;;  %411 = vmatprep.mubr.bf16.mxu1 %v1042_v0  ;;  %s1043_s21 = smov 4  }
  0x28   :  { %77 = sst [smem:[#allocation12 + $0x1]] %s1041_s20  ;;  %854 = vset.pattern.permute.xlu0 %v1042_v0  ;;  %s1044_s22 = smov 64  }
  0x29   :  { %79 = sst [smem:[#allocation12 + $0x2]] %s1043_s21  ;;  %s1045_s23 = smov 128  }
  0x2a   :  { %81 = sst [smem:[#allocation12 + $0x3]] %s1044_s22  ;;  %s1046_s24 = smov 2  }
  0x2b   :  { %83 = sst [smem:[#allocation12 + $0x4]] %s1045_s23  ;;  %s1047_s2 = smov [#allocation2]  }
  0x2c   :  { %85 = sst [smem:[#allocation12 + $0x5]] %s1046_s24  ;;  %s71_s16 = sshll.u32 %s1047_s2, 4  ;;  %s72_s16 = int_to_ptr.vmem [resolvable:$true] %s71_s16 }
  0x2d   :  { %s765_s25 = sshll.u32 %s63_s19, 26  ;;  %87 = sst [smem:[#allocation12 + $0x6]] %s1039_s1 }
  0x2e   :  { %s766_s26 = sadd.s32 134217728, %s765_s25  ;;  %89 = sst [smem:[#allocation12 + $0x7]] %s1044_s22 }
  0x2f   :  { %91 = sst [smem:[#allocation12 + $0x8]] %s1043_s21  ;;  %s1048_s27 = smov [#allocation4]  }
  0x30   :  { %s1049_s28 = smov [#allocation11]   ;;  %s983_s17 = scalar_lea.hbm %s1223_s6, 1024 }
  0x31   :  { %93 = dma.general %s1221_s4, 8192, %s72_s16, %s1048_s27, %s1049_s28, [#allocation12], %s766_s26, 0  }
  0x32   :  { %v855_v1 = vld [vmem:[#allocation8 + $0x4] ss:$16 sps:$4 sm:$0xff]   ;;  %v857_v2 = vld [vmem:[#allocation8 + $0xc] ss:$16 sps:$4 sm:$0xff]   ;;  %v859_v3 = vld [vmem:[#allocation8] ss:$16 sps:$4 sm:$0xff]   ;;  %p984_p2 = scmp.ne.s32.totalorder %s1223_s6, %s983_s17  ;;  %p987_p3 = scmp.lt.u32.totalorder %s983_s17, %s1223_s6 }
  0x33   :  { %338 = vmatprep.subr.bf16.mxu0 %v855_v1  ;;  %v860_v4 = vld [vmem:[#allocation8 + $0x8] ss:$16 sps:$4 sm:$0xff]   ;;  %379 = vmatprep.subr.bf16.mxu1 %v857_v2  ;;  %v861_v5 = vld [vmem:[#allocation8 + $0x24] ss:$16 sps:$4 sm:$0xff]   ;;  %v863_v6 = vld [vmem:[#allocation8 + $0x2c] ss:$16 sps:$4 sm:$0xff]  }
  0x34   :  { %339 = vmatpush1.bf16.msra.mxu0 %v859_v3  ;;  %380 = vmatpush1.bf16.msra.mxu1 %v860_v4  ;;  %v865_v7 = vld [vmem:[#allocation8 + $0x20] ss:$16 sps:$4 sm:$0xff]   ;;  %v866_v8 = vld [vmem:[#allocation8 + $0x28] ss:$16 sps:$4 sm:$0xff]   ;;  %v867_v9 = vld [vmem:[#allocation8 + $0x44] ss:$16 sps:$4 sm:$0xff]   ;;  %p989_p4 = pnand %p987_p3, %p984_p2 }
  0x35   :  { %340 = vmatprep.subr.bf16.mxu0 %v861_v5  ;;  %381 = vmatprep.subr.bf16.mxu1 %v863_v6  ;;  %v869_v10 = vld [vmem:[#allocation8 + $0x4c] ss:$16 sps:$4 sm:$0xff]   ;;  %v871_v11 = vld [vmem:[#allocation8 + $0x40] ss:$16 sps:$4 sm:$0xff]   ;;  %v872_v12 = vld [vmem:[#allocation8 + $0x48] ss:$16 sps:$4 sm:$0xff]  }
  0x36   :  { %v873_v13 = vld [vmem:[#allocation8 + $0x64] ss:$16 sps:$4 sm:$0xff]   ;;  %v875_v14 = vld [vmem:[#allocation8 + $0x6c] ss:$16 sps:$4 sm:$0xff]   ;;  %v877_v15 = vld [vmem:[#allocation8 + $0x60] ss:$16 sps:$4 sm:$0xff]  }
  0x37   :  { %v878_v16 = vld [vmem:[#allocation8 + $0x68] ss:$16 sps:$4 sm:$0xff]   ;;  %v879_v17 = vld [vmem:[#allocation8 + $0x84] ss:$16 sps:$4 sm:$0xff]   ;;  %v881_v18 = vld [vmem:[#allocation8 + $0x8c] ss:$16 sps:$4 sm:$0xff]  }
  0x38   :  { %341 = vmatpush1.bf16.msra.mxu0 %v865_v7  ;;  %382 = vmatpush1.bf16.msra.mxu1 %v866_v8  ;;  %v883_v19 = vld [vmem:[#allocation8 + $0x80] ss:$16 sps:$4 sm:$0xff]   ;;  %v884_v20 = vld [vmem:[#allocation8 + $0x88] ss:$16 sps:$4 sm:$0xff]   ;;  %v885_v21 = vld [vmem:[#allocation8 + $0xa4] ss:$16 sps:$4 sm:$0xff]  }
  0x39   :  { %342 = vmatprep.subr.bf16.mxu0 %v867_v9  ;;  %383 = vmatprep.subr.bf16.mxu1 %v869_v10  ;;  %v887_v22 = vld [vmem:[#allocation8 + $0xac] ss:$16 sps:$4 sm:$0xff]   ;;  %v889_v23 = vld [vmem:[#allocation8 + $0xa0] ss:$16 sps:$4 sm:$0xff]   ;;  %v890_v24 = vld [vmem:[#allocation8 + $0xa8] ss:$16 sps:$4 sm:$0xff]  }
  0x3a   :  { %v891_v25 = vld [vmem:[#allocation8 + $0xc4] ss:$16 sps:$4 sm:$0xff]   ;;  %v893_v26 = vld [vmem:[#allocation8 + $0xcc] ss:$16 sps:$4 sm:$0xff]   ;;  %v895_v28 = vld [vmem:[#allocation8 + $0xc0] ss:$16 sps:$4 sm:$0xff]  }
  0x3b   :  { %v106_v27 = vld [vmem:[%s1217_s0] sm:$0xff]  ;;  %v896_v29 = vld [vmem:[#allocation8 + $0xc8] ss:$16 sps:$4 sm:$0xff]   ;;  %v899_v31 = vld [vmem:[#allocation8 + $0xec] ss:$16 sps:$4 sm:$0xff]   ;;  %s1050_s0 = smov [#allocation3]  }
  0x3c   :  { %343 = vmatpush1.bf16.msra.mxu0 %v871_v11  ;;  %384 = vmatpush1.bf16.msra.mxu1 %v872_v12  ;;  %v897_v30 = vld [vmem:[#allocation8 + $0xe4] ss:$16 sps:$4 sm:$0xff]   ;;  %v901_v32 = vld [vmem:[#allocation8 + $0xe0] ss:$16 sps:$4 sm:$0xff]   ;;  %v902_v33 = vld [vmem:[#allocation8 + $0xe8] ss:$16 sps:$4 sm:$0xff]  }
  0x3d   :  { %344 = vmatprep.subr.bf16.mxu0 %v873_v13  ;;  %385 = vmatprep.subr.bf16.mxu1 %v875_v14  ;;  %v144_v34 = vld [vmem:[%s1225_s8] sm:$0x1]  ;;  %s102_s15 = sshll.u32 %s1050_s0, 4  ;;  %s103_s15 = int_to_ptr.vmem [resolvable:$true] %s102_s15 }
  0x3e   :  { %113 = vperm.xlu0 %854, %v106_v27   ;;  %v145_v35 = vpack.c.bf16 %v144_v34, %v144_v34 }
  0x40   :  { %345 = vmatpush1.bf16.msra.mxu0 %v877_v15  ;;  %386 = vmatpush1.bf16.msra.mxu1 %v878_v16 }
  0x41   :  { %346 = vmatprep.subr.bf16.mxu0 %v879_v17  ;;  %387 = vmatprep.subr.bf16.mxu1 %v881_v18 }
  0x44   :  { %347 = vmatpush1.bf16.msra.mxu0 %v883_v19  ;;  %388 = vmatpush1.bf16.msra.mxu1 %v884_v20 }
  0x45   :  { %348 = vmatprep.subr.bf16.mxu0 %v885_v21  ;;  %389 = vmatprep.subr.bf16.mxu1 %v887_v22 }
  0x48   :  { %349 = vmatpush1.bf16.msra.mxu0 %v889_v23  ;;  %390 = vmatpush1.bf16.msra.mxu1 %v890_v24 }
  0x49   :  { %350 = vmatprep.subr.bf16.mxu0 %v891_v25  ;;  %391 = vmatprep.subr.bf16.mxu1 %v893_v26 }
  0x4c   :  { %351 = vmatpush1.bf16.msra.mxu0 %v895_v28  ;;  %392 = vmatpush1.bf16.msra.mxu1 %v896_v29 }
  0x4d   :  { %352 = vmatprep.subr.bf16.mxu0 %v897_v30  ;;  %393 = vmatprep.subr.bf16.mxu1 %v899_v31 }
  0x50   :  { %353 = vmatpush1.bf16.msra.mxu0 %v901_v32  ;;  %394 = vmatpush1.bf16.msra.mxu1 %v902_v33 }
  0x53   :  { %371 = vmatmul.mubr.bf16.vlgmr.msra.gmra.mrb[0].mxu0 %v145_v35  ;;  %412 = vmatmul.mubr.bf16.vlgmr.msra.gmra.mrb[0].mxu1 %v145_v35 }
  0x54   :  { %992 = shalt.err (!%p989_p4)  }
  0x55   :  { %s993_s22 = scalar_lea.vmem %s103_s15, 1024  ;;  %p998_p6 = scmp.lt.s32.totalorder %s103_s15, %s103_s15 }
  0x56   :  { %p994_p5 = scmp.ne.s32.totalorder %s103_s15, %s993_s22  ;;  %p999_p7 = scmp.lt.s32.totalorder %s993_s22, %s993_s22 }
  0x58   :  { %p1000_p8 = por %p999_p7, %p998_p6 }
  0x5a   :  { %p1001_p9 = pnand %p1000_p8, %p994_p5 }
  0x5c   :  { %1004 = shalt.err (!%p1001_p9)  }
  0x5d   :  { %105 = dma.hbm_to_vmem [thread:$0]  %s1223_s6, 1024, %s103_s15, [#allocation4 + $0x1]  ;;  %v107_v36 = vld [vmem:[#allocation5] sm:$0xff]  ;;  %v108_v38 = vld [vmem:[#allocation5 + $0x8] sm:$0xff]  ;;  %v109_v41 = vld [vmem:[#allocation5 + $0x10] sm:$0xff]  ;;  %v426_v51 = vlaneseq }
  0x5e   :  { %v110_v44 = vld [vmem:[#allocation5 + $0x18] sm:$0xff]  ;;  %v424_v62 = vld [vmem:[%s1220_s3] sm:$0xf] }
  0x5f   :  { %v1161_v56 = vshrl.u32 %v426_v51, 7 }
  0x61   :  { %v428_v61 = vsub.s32 0, %v1161_v56  ;;  %v432_v0 = vsub.s32 1, %v1161_v56  ;;  %v436_v18 = vsub.s32 2, %v1161_v56  ;;  %v440_v26 = vsub.s32 3, %v1161_v56 }
  0x63   :  { %v429_v4 = vrot.slane %v424_v62, %v428_v61  ;;  %v433_v8 = vrot.slane %v424_v62, %v432_v0  ;;  %v437_v28 = vrot.slane %v424_v62, %v436_v18  ;;  %v441_v31 = vrot.slane %v424_v62, %v440_v26 }
  0xbd   :  { %v114_v37 = vpop.permute.xlu0 %113 }
  0xbe   :  { %v116_v39 = vmul.f32 %v114_v37, %v107_v36  ;;  %v117_v40 = vmul.f32 %v114_v37, %v108_v38  ;;  %v118_v45 = vmul.f32 %v114_v37, %v109_v41  ;;  %v119_v47 = vmul.f32 %v114_v37, %v110_v44 }
  0xc0   :  { %v120_v42 = vrot.slane %v116_v39, 4  ;;  %v126_v43 = vrot.slane %v117_v40, 4  ;;  %v132_v49 = vrot.slane %v118_v45, 4  ;;  %v138_v52 = vrot.slane %v119_v47, 4 }
  0xc2   :  { %v121_v46 = vadd.f32 %v120_v42, %v116_v39  ;;  %v127_v48 = vadd.f32 %v126_v43, %v117_v40  ;;  %v133_v54 = vadd.f32 %v132_v49, %v118_v45  ;;  %v139_v57 = vadd.f32 %v138_v52, %v119_v47  ;;  %v450_v42 = vld [vmem:[%s1226_s9] sm:$0x1] }
  0xc4   :  { %v122_v50 = vrot.slane %v121_v46, 2  ;;  %v128_v53 = vrot.slane %v127_v48, 2  ;;  %v134_v59 = vrot.slane %v133_v54, 2  ;;  %v140_v1 = vrot.slane %v139_v57, 2 }
  0xc6   :  { %v123_v55 = vadd.f32 %v122_v50, %v121_v46  ;;  %v129_v58 = vadd.f32 %v128_v53, %v127_v48  ;;  %v135_v2 = vadd.f32 %v134_v59, %v133_v54  ;;  %v141_v9 = vadd.f32 %v140_v1, %v139_v57 }
  0xc8   :  { %v124_v60 = vrot.slane %v123_v55, 1  ;;  %v130_v63 = vrot.slane %v129_v58, 1  ;;  %v136_v11 = vrot.slane %v135_v2, 1  ;;  %v142_v22 = vrot.slane %v141_v9, 1 }
  0xca   :  { %v125_v3 = vadd.f32 %v124_v60, %v123_v55  ;;  %v131_v7 = vadd.f32 %v130_v63, %v129_v58  ;;  %v137_v24 = vadd.f32 %v136_v11, %v135_v2  ;;  %v143_v29 = vadd.f32 %v142_v22, %v141_v9 }
 0x126   :  { %v372_v5 = vpop.f32.mrb[0].mxu0  ;;  %v413_v6 = vpop.f32.mrb[0].mxu1 }
 0x127   :  { %v420_v10 = vadd.f32 %v372_v5, %v125_v3  ;;  %v374_v12 = vpop.f32.mrb[1].mxu0  ;;  %v415_v13 = vpop.f32.mrb[1].mxu1  ;;  %v422_v27 = vadd.f32 %v413_v6, %v137_v24 }
 0x128   :  { %v421_v14 = vadd.f32 %v374_v12, %v131_v7  ;;  %v376_v15 = vpop.f32.mrb[2].mxu0  ;;  %v417_v16 = vpop.f32.mrb[2].mxu1  ;;  %v423_v30 = vadd.f32 %v415_v13, %v143_v29 }
 0x129   :  { %v446_v17 = vadd.f32 %v429_v4, %v420_v10  ;;  %v377_v19 = vpop.f32.mrb[3].mxu0  ;;  %v418_v20 = vpop.f32.mrb[3].mxu1  ;;  %v448_v32 = vadd.f32 %v437_v28, %v422_v27 }
 0x12a   :  { %v447_v21 = vadd.f32 %v433_v8, %v421_v14  ;;  %v449_v33 = vadd.f32 %v441_v31, %v423_v30 }
 0x12b   :  { %v799_v23 = vmul.f32 -1.442695, %v446_v17  ;;  %v801_v34 = vmul.f32 -1.442695, %v448_v32 }
 0x12c   :  { %v800_v25 = vmul.f32 -1.442695, %v447_v21 }
 0x12d   :  { %903 = vpow2.f32 %v799_v23 }
 0x12e   :  { %905 = vpow2.f32 %v800_v25 }
 0x12f   :  { %907 = vtanh.f32 %v449_v33 }
 0x130   :  { %909 = vpow2.f32 %v801_v34 }
 0x137   :  { %v904_v35 = vpop.eup %903 }
 0x138   :  { %v460_v36 = vadd.f32 1.0, %v904_v35  ;;  %v906_v37 = vpop.eup %905 }
 0x139   :  { %v461_v38 = vadd.f32 1.0, %v906_v37  ;;  %v908_v39 = vpop.eup %907 }
 0x13a   :  { %911 = vrcp.f32 %v460_v36  ;;  %v910_v40 = vpop.eup %909 }
 0x13b   :  { %913 = vrcp.f32 %v461_v38  ;;  %v462_v45 = vadd.f32 1.0, %v910_v40 }
 0x13d   :  { %915 = vrcp.f32 %v462_v45 }
 0x144   :  { %v912_v41 = vpop.eup %911 }
 0x145   :  { %v471_v43 = vmul.f32 %v912_v41, %v908_v39  ;;  %v914_v44 = vpop.eup %913 }
 0x146   :  { %v470_v46 = vmul.f32 %v914_v44, %v450_v42 }
 0x147   :  { %v916_v48 = vpop.eup %915 }
 0x148   :  { %v472_v47 = vadd.f32 %v471_v43, %v470_v46 }
 0x14a   :  { %917 = vtanh.f32 %v472_v47 }
 0x154   :  { %v918_v49 = vpop.eup %917 }
 0x155   :  { %v1181_v50 = vmul.f32 %v918_v49, %v916_v48 }
 0x156   :  { %1031 = dma.done.wait [#allocation4], 8192 }
 0x157   :  { %1032 = vsyncadd [#allocation4], 4294959104  ;;  %v483_v51 = vld [vmem:[#allocation2 + $0x8] sm:$0xff]  ;;  %v482_v52 = vld [vmem:[#allocation2] sm:$0xff] }
 0x158   :  { %v487_v53 = vld [vmem:[#allocation2 + $0x28] sm:$0xff]  ;;  %568 = vmatprep.subr.bf16.mxu0 %v483_v51  ;;  %v485_v54 = vld [vmem:[#allocation2 + $0x18] sm:$0xff]  ;;  %v486_v55 = vld [vmem:[#allocation2 + $0x20] sm:$0xff] }
 0x159   :  { %569 = vmatpush1.bf16.msra.mxu0 %v482_v52  ;;  %609 = vmatprep.subr.bf16.mxu1 %v485_v54  ;;  %v484_v57 = vld [vmem:[#allocation2 + $0x10] sm:$0xff]  ;;  %v489_v58 = vld [vmem:[#allocation2 + $0x38] sm:$0xff]  ;;  %v491_v59 = vld [vmem:[#allocation2 + $0x48] sm:$0xff] }
 0x15a   :  { %570 = vmatprep.subr.bf16.mxu0 %v487_v53  ;;  %610 = vmatpush1.bf16.msra.mxu1 %v484_v57  ;;  %v488_v60 = vld [vmem:[#allocation2 + $0x30] sm:$0xff]  ;;  %v493_v62 = vld [vmem:[#allocation2 + $0x58] sm:$0xff]  ;;  %v490_v63 = vld [vmem:[#allocation2 + $0x40] sm:$0xff] }
 0x15b   :  { %611 = vmatprep.subr.bf16.mxu1 %v489_v58  ;;  %v495_v1 = vld [vmem:[#allocation2 + $0x68] sm:$0xff]  ;;  %v492_v2 = vld [vmem:[#allocation2 + $0x50] sm:$0xff]  ;;  %v497_v3 = vld [vmem:[#allocation2 + $0x78] sm:$0xff] }
 0x15c   :  { %v494_v4 = vld [vmem:[#allocation2 + $0x60] sm:$0xff]  ;;  %v499_v5 = vld [vmem:[#allocation2 + $0x88] sm:$0xff]  ;;  %v496_v6 = vld [vmem:[#allocation2 + $0x70] sm:$0xff] }
 0x15d   :  { %571 = vmatpush1.bf16.msra.mxu0 %v486_v55  ;;  %v501_v7 = vld [vmem:[#allocation2 + $0x98] sm:$0xff]  ;;  %v498_v8 = vld [vmem:[#allocation2 + $0x80] sm:$0xff]  ;;  %v503_v9 = vld [vmem:[#allocation2 + $0xa8] sm:$0xff] }
 0x15e   :  { %572 = vmatprep.subr.bf16.mxu0 %v491_v59  ;;  %612 = vmatpush1.bf16.msra.mxu1 %v488_v60  ;;  %v500_v10 = vld [vmem:[#allocation2 + $0x90] sm:$0xff]  ;;  %v505_v11 = vld [vmem:[#allocation2 + $0xb8] sm:$0xff]  ;;  %v502_v12 = vld [vmem:[#allocation2 + $0xa0] sm:$0xff]  ;;  %v479_v59 = vpack.c.bf16 %v1181_v50, %v1181_v50 }
 0x15f   :  { %613 = vmatprep.subr.bf16.mxu1 %v493_v62  ;;  %v480_v13 = vld [vmem:[%s1225_s8 + $0x1] sm:$0x1]  ;;  %v507_v14 = vld [vmem:[#allocation2 + $0xc8] sm:$0xff]  ;;  %v509_v17 = vld [vmem:[#allocation2 + $0xd8] sm:$0xff] }
 0x160   :  { %v481_v15 = vpack.c.bf16 %v480_v13, %v480_v13  ;;  %v504_v16 = vld [vmem:[#allocation2 + $0xb0] sm:$0xff]  ;;  %v506_v19 = vld [vmem:[#allocation2 + $0xc0] sm:$0xff]  ;;  %v511_v20 = vld [vmem:[#allocation2 + $0xe8] sm:$0xff] }
 0x161   :  { %573 = vmatpush1.bf16.msra.mxu0 %v490_v63  ;;  %v508_v21 = vld [vmem:[#allocation2 + $0xd0] sm:$0xff]  ;;  %v513_v22 = vld [vmem:[#allocation2 + $0xf8] sm:$0xff]  ;;  %v510_v23 = vld [vmem:[#allocation2 + $0xe0] sm:$0xff] }
 0x162   :  { %574 = vmatprep.subr.bf16.mxu0 %v495_v1  ;;  %614 = vmatpush1.bf16.msra.mxu1 %v492_v2  ;;  %v515_v24 = vld [vmem:[#allocation2 + $0x108] sm:$0xff]  ;;  %v512_v25 = vld [vmem:[#allocation2 + $0xf0] sm:$0xff]  ;;  %v517_v27 = vld [vmem:[#allocation2 + $0x118] sm:$0xff] }
 0x163   :  { %615 = vmatprep.subr.bf16.mxu1 %v497_v3  ;;  %600 = vmatprep.mubr.bf16.mxu0 %v481_v15  ;;  %v514_v28 = vld [vmem:[#allocation2 + $0x100] sm:$0xff]  ;;  %v519_v29 = vld [vmem:[#allocation2 + $0x128] sm:$0xff]  ;;  %v516_v30 = vld [vmem:[#allocation2 + $0x110] sm:$0xff] }
 0x164   :  { %641 = vmatprep.mubr.bf16.mxu1 %v481_v15  ;;  %v521_v31 = vld [vmem:[#allocation2 + $0x138] sm:$0xff]  ;;  %v518_v32 = vld [vmem:[#allocation2 + $0x120] sm:$0xff]  ;;  %v523_v33 = vld [vmem:[#allocation2 + $0x148] sm:$0xff] }
 0x165   :  { %575 = vmatpush1.bf16.msra.mxu0 %v494_v4  ;;  %v520_v34 = vld [vmem:[#allocation2 + $0x130] sm:$0xff]  ;;  %v525_v35 = vld [vmem:[#allocation2 + $0x158] sm:$0xff]  ;;  %v522_v36 = vld [vmem:[#allocation2 + $0x140] sm:$0xff] }
 0x166   :  { %576 = vmatprep.subr.bf16.mxu0 %v499_v5  ;;  %616 = vmatpush1.bf16.msra.mxu1 %v496_v6  ;;  %v527_v37 = vld [vmem:[#allocation2 + $0x168] sm:$0xff]  ;;  %v524_v38 = vld [vmem:[#allocation2 + $0x150] sm:$0xff]  ;;  %v529_v39 = vld [vmem:[#allocation2 + $0x178] sm:$0xff] }
 0x167   :  { %617 = vmatprep.subr.bf16.mxu1 %v501_v7  ;;  %v526_v40 = vld [vmem:[#allocation2 + $0x160] sm:$0xff]  ;;  %v531_v41 = vld [vmem:[#allocation2 + $0x188] sm:$0xff]  ;;  %v528_v42 = vld [vmem:[#allocation2 + $0x170] sm:$0xff] }
 0x168   :  { %v533_v43 = vld [vmem:[#allocation2 + $0x198] sm:$0xff]  ;;  %v530_v44 = vld [vmem:[#allocation2 + $0x180] sm:$0xff]  ;;  %v535_v45 = vld [vmem:[#allocation2 + $0x1a8] sm:$0xff] }
 0x169   :  { %577 = vmatpush1.bf16.msra.mxu0 %v498_v8  ;;  %v532_v46 = vld [vmem:[#allocation2 + $0x190] sm:$0xff]  ;;  %v537_v47 = vld [vmem:[#allocation2 + $0x1b8] sm:$0xff]  ;;  %v534_v48 = vld [vmem:[#allocation2 + $0x1a0] sm:$0xff] }
 0x16a   :  { %578 = vmatprep.subr.bf16.mxu0 %v503_v9  ;;  %618 = vmatpush1.bf16.msra.mxu1 %v500_v10  ;;  %v539_v49 = vld [vmem:[#allocation2 + $0x1c8] sm:$0xff]  ;;  %v536_v51 = vld [vmem:[#allocation2 + $0x1b0] sm:$0xff]  ;;  %v541_v52 = vld [vmem:[#allocation2 + $0x1d8] sm:$0xff] }
 0x16b   :  { %619 = vmatprep.subr.bf16.mxu1 %v505_v11  ;;  %v538_v53 = vld [vmem:[#allocation2 + $0x1c0] sm:$0xff]  ;;  %v543_v54 = vld [vmem:[#allocation2 + $0x1e8] sm:$0xff]  ;;  %v540_v55 = vld [vmem:[#allocation2 + $0x1d0] sm:$0xff] }
 0x16c   :  { %v545_v57 = vld [vmem:[#allocation2 + $0x1f8] sm:$0xff]  ;;  %v542_v58 = vld [vmem:[#allocation2 + $0x1e0] sm:$0xff]  ;;  %v544_v60 = vld [vmem:[#allocation2 + $0x1f0] sm:$0xff] }
 0x16d   :  { %579 = vmatpush1.bf16.msra.mxu0 %v502_v12  ;;  %v546_v62 = vld [vmem:[%s1222_s5] sm:$0xf] }
 0x16e   :  { %580 = vmatprep.subr.bf16.mxu0 %v507_v14  ;;  %620 = vmatpush1.bf16.msra.mxu1 %v504_v16  ;;  %v551_v63 = vrot.slane %v546_v62, %v428_v61  ;;  %v555_v1 = vrot.slane %v546_v62, %v432_v0  ;;  %v559_v9 = vrot.slane %v546_v62, %v436_v18 }
 0x16f   :  { %621 = vmatprep.subr.bf16.mxu1 %v509_v17  ;;  %v563_v0 = vrot.slane %v546_v62, %v440_v26 }
 0x171   :  { %581 = vmatpush1.bf16.msra.mxu0 %v506_v19 }
 0x172   :  { %582 = vmatprep.subr.bf16.mxu0 %v511_v20  ;;  %622 = vmatpush1.bf16.msra.mxu1 %v508_v21 }
 0x173   :  { %623 = vmatprep.subr.bf16.mxu1 %v513_v22  ;;  %v650_v22 = vld [vmem:[%s1226_s9 + $0x1] sm:$0x1] }
 0x175   :  { %583 = vmatpush1.bf16.msra.mxu0 %v510_v23 }
 0x176   :  { %584 = vmatprep.subr.bf16.mxu0 %v515_v24  ;;  %624 = vmatpush1.bf16.msra.mxu1 %v512_v25 }
 0x177   :  { %625 = vmatprep.subr.bf16.mxu1 %v517_v27 }
 0x179   :  { %585 = vmatpush1.bf16.msra.mxu0 %v514_v28 }
 0x17a   :  { %586 = vmatprep.subr.bf16.mxu0 %v519_v29  ;;  %626 = vmatpush1.bf16.msra.mxu1 %v516_v30 }
 0x17b   :  { %627 = vmatprep.subr.bf16.mxu1 %v521_v31 }
 0x17d   :  { %587 = vmatpush1.bf16.msra.mxu0 %v518_v32 }
 0x17e   :  { %588 = vmatprep.subr.bf16.mxu0 %v523_v33  ;;  %628 = vmatpush1.bf16.msra.mxu1 %v520_v34 }
 0x17f   :  { %629 = vmatprep.subr.bf16.mxu1 %v525_v35 }
 0x181   :  { %589 = vmatpush1.bf16.msra.mxu0 %v522_v36 }
 0x182   :  { %590 = vmatprep.subr.bf16.mxu0 %v527_v37  ;;  %630 = vmatpush1.bf16.msra.mxu1 %v524_v38 }
 0x183   :  { %631 = vmatprep.subr.bf16.mxu1 %v529_v39 }
 0x185   :  { %591 = vmatpush1.bf16.msra.mxu0 %v526_v40 }
 0x186   :  { %592 = vmatprep.subr.bf16.mxu0 %v531_v41  ;;  %632 = vmatpush1.bf16.msra.mxu1 %v528_v42 }
 0x187   :  { %633 = vmatprep.subr.bf16.mxu1 %v533_v43 }
 0x189   :  { %593 = vmatpush1.bf16.msra.mxu0 %v530_v44 }
 0x18a   :  { %594 = vmatprep.subr.bf16.mxu0 %v535_v45  ;;  %634 = vmatpush1.bf16.msra.mxu1 %v532_v46 }
 0x18b   :  { %635 = vmatprep.subr.bf16.mxu1 %v537_v47 }
 0x18d   :  { %595 = vmatpush1.bf16.msra.mxu0 %v534_v48 }
 0x18e   :  { %596 = vmatprep.subr.bf16.mxu0 %v539_v49  ;;  %636 = vmatpush1.bf16.msra.mxu1 %v536_v51 }
 0x18f   :  { %637 = vmatprep.subr.bf16.mxu1 %v541_v52 }
 0x191   :  { %597 = vmatpush1.bf16.msra.mxu0 %v538_v53 }
 0x192   :  { %598 = vmatprep.subr.bf16.mxu0 %v543_v54  ;;  %638 = vmatpush1.bf16.msra.mxu1 %v540_v55 }
 0x193   :  { %639 = vmatprep.subr.bf16.mxu1 %v545_v57 }
 0x195   :  { %599 = vmatpush1.bf16.msra.mxu0 %v542_v58 }
 0x196   :  { %640 = vmatpush1.bf16.msra.mxu1 %v544_v60 }
 0x198   :  { %601 = vmatmul.mubr.bf16.vlgmr.msra.gmra.mrb[4].mxu0 %v479_v59 }
 0x199   :  { %642 = vmatmul.mubr.bf16.vlgmr.msra.gmra.mrb[4].mxu1 %v479_v59 }
 0x26b   :  { %v602_v2 = vpop.f32.mrb[4].mxu0 }
 0x26c   :  { %v603_v3 = vadd.f32 %v602_v2, %v551_v63  ;;  %v604_v4 = vpop.f32.mrb[5].mxu0  ;;  %v643_v6 = vpop.f32.mrb[4].mxu1 }
 0x26d   :  { %v605_v50 = vadd.f32 %v604_v4, %v555_v1  ;;  %v606_v5 = vpop.f32.mrb[6].mxu0  ;;  %v645_v10 = vpop.f32.mrb[5].mxu1  ;;  %v644_v61 = vadd.f32 %v643_v6, %v559_v9 }
 0x26e   :  { %v802_v7 = vmul.f32 -1.442695, %v603_v3  ;;  %v607_v8 = vpop.f32.mrb[7].mxu0  ;;  %v647_v12 = vpop.f32.mrb[6].mxu1  ;;  %v646_v15 = vadd.f32 %v645_v10, %v563_v0 }
 0x26f   :  { %v803_v11 = vmul.f32 -1.442695, %v605_v50  ;;  %v648_v13 = vpop.f32.mrb[7].mxu1  ;;  %v804_v14 = vmul.f32 -1.442695, %v644_v61 }
 0x270   :  { %919 = vpow2.f32 %v802_v7 }
 0x271   :  { %921 = vpow2.f32 %v803_v11 }
 0x272   :  { %923 = vpow2.f32 %v804_v14 }
 0x273   :  { %925 = vtanh.f32 %v646_v15 }
 0x27a   :  { %v920_v16 = vpop.eup %919 }
 0x27b   :  { %v922_v17 = vpop.eup %921  ;;  %v660_v19 = vadd.f32 1.0, %v920_v16 }
 0x27c   :  { %v661_v20 = vadd.f32 1.0, %v922_v17  ;;  %v924_v18 = vpop.eup %923 }
 0x27d   :  { %927 = vrcp.f32 %v660_v19  ;;  %v926_v21 = vpop.eup %925  ;;  %v662_v24 = vadd.f32 1.0, %v924_v18 }
 0x27e   :  { %929 = vrcp.f32 %v661_v20 }
 0x27f   :  { %931 = vrcp.f32 %v662_v24 }
 0x287   :  { %v928_v23 = vpop.eup %927 }
 0x288   :  { %v930_v56 = vpop.eup %929  ;;  %v671_v26 = vmul.f32 %v928_v23, %v926_v21 }
 0x289   :  { %v670_v25 = vmul.f32 %v930_v56, %v650_v22  ;;  %v932_v28 = vpop.eup %931 }
 0x28b   :  { %v672_v27 = vadd.f32 %v671_v26, %v670_v25 }
 0x28d   :  { %933 = vtanh.f32 %v672_v27 }
 0x297   :  { %v934_v29 = vpop.eup %933 }
 0x298   :  { %v674_v30 = vmul.f32 %v934_v29, %v932_v28 }
 0x299   :  { %1033 = dma.done.wait [#allocation4 + $0x1], 1024 }
 0x29a   :  { %1034 = vsyncadd [#allocation4 + $0x1], 4294966272  ;;  %v1051_v31 = vmov 0.0   ;;  %vm1052_vm0 = vmmov 0   ;;  %v680_v32 = vld [vmem:[#allocation3] sm:$0xff]  ;;  %v681_v33 = vld [vmem:[#allocation3 + $0x8] sm:$0xff]  ;;  %v679_v40 = vpack.c.bf16 %v674_v30, %v674_v30 }
 0x29b   :  { %817 = vmatprep.subr.bf16.mxu0 %v1051_v31  ;;  %833 = vmatprep.mubr.msk.bf16.mxu0 %vm1052_vm0, %v1051_v31  ;;  %v682_v34 = vld [vmem:[#allocation3 + $0x10] sm:$0xff]  ;;  %v683_v35 = vld [vmem:[#allocation3 + $0x18] sm:$0xff]  ;;  %v684_v36 = vld [vmem:[#allocation3 + $0x20] sm:$0xff]  ;;  %s1053_s30 = smov [#allocation10]  }
 0x29c   :  { %818 = vmatpush3.bf16.msra.mxu0 %v680_v32  ;;  %v685_v37 = vld [vmem:[#allocation3 + $0x28] sm:$0xff]  ;;  %v686_v38 = vld [vmem:[#allocation3 + $0x30] sm:$0xff]  ;;  %v687_v39 = vld [vmem:[#allocation3 + $0x38] sm:$0xff]  ;;  %s742_s4 = sshll.u32 %s1053_s30, 4  ;;  %s743_s4 = int_to_ptr.vmem [resolvable:$true] %s742_s4 }
 0x29d   :  { %819 = vmatprep.subr.bf16.mxu0 %v1051_v31  ;;  %v688_v41 = vld [vmem:[%s1224_s7] sm:$0x1]  ;;  %s1005_s11 = scalar_lea.vmem %s743_s4, 16  ;;  %s1009_s12 = scalar_lea.vmem %s743_s4, 32 }
 0x29e   :  { %p1006_p10 = scmp.ne.s32.totalorder %s743_s4, %s1005_s11  ;;  %p1010_p11 = scmp.lt.s32.totalorder %s743_s4, %s743_s4 }
 0x29f   :  { %p1011_p12 = scmp.lt.s32.totalorder %s1009_s12, %s1005_s11 }
 0x2a0   :  { %820 = vmatpush3.bf16.msra.mxu0 %v681_v33 }
 0x2a1   :  { %821 = vmatprep.subr.bf16.mxu0 %v1051_v31  ;;  %p1012_p13 = por %p1011_p12, %p1010_p11 }
 0x2a3   :  { %p1013_p0 = pnand %p1012_p13, %p1006_p10 }
 0x2a4   :  { %822 = vmatpush3.bf16.msra.mxu0 %v682_v34 }
 0x2a5   :  { %823 = vmatprep.subr.bf16.mxu0 %v1051_v31 }
 0x2a8   :  { %824 = vmatpush3.bf16.msra.mxu0 %v683_v35 }
 0x2a9   :  { %825 = vmatprep.subr.bf16.mxu0 %v1051_v31 }
 0x2ac   :  { %826 = vmatpush3.bf16.msra.mxu0 %v684_v36 }
 0x2ad   :  { %827 = vmatprep.subr.bf16.mxu0 %v1051_v31 }
 0x2b0   :  { %828 = vmatpush3.bf16.msra.mxu0 %v685_v37 }
 0x2b1   :  { %829 = vmatprep.subr.bf16.mxu0 %v1051_v31 }
 0x2b4   :  { %830 = vmatpush3.bf16.msra.mxu0 %v686_v38 }
 0x2b5   :  { %831 = vmatprep.subr.bf16.mxu0 %v1051_v31 }
 0x2b8   :  { %832 = vmatpush3.bf16.msra.mxu0 %v687_v39 }
 0x2bb   :  { %834 = vmatmul.mubr.bf16.vlgmr.msra.gmra.mrb[8].mxu0 %v679_v40 }
 0x38e   :  { %v723_v42 = vpop.f32.mrb[8].mxu0 }
 0x38f   :  { %v724_v43 = vadd.f32 %v723_v42, %v688_v41  ;;  %v835_v44 = vpop.f32.mrb[9].mxu0 }
 0x390   :  { %v726_v45 = vpop.f32.mrb[10].mxu0 }
 0x391   :  { %v805_v46 = vmul.f32 -1.442695, %v724_v43  ;;  %v836_v47 = vpop.f32.mrb[11].mxu0 }
 0x393   :  { %935 = vpow2.f32 %v805_v46 }
 0x39d   :  { %v936_v48 = vpop.eup %935 }
 0x39e   :  { %v732_v49 = vadd.f32 1.0, %v936_v48 }
 0x3a0   :  { %937 = vrcp.f32 %v732_v49 }
 0x3aa   :  { %v938_v51 = vpop.eup %937 }
 0x3ab   :  { %735 = vst [vmem:[#allocation10] sm:$0x1] %v938_v51 }
 0x3ac   :  { %1016 = shalt.err (!%p1013_p0)
}
 0x3ad   :  { %s1017_s0 = scalar_lea.hbm %s1227_s10, 16 }
 0x3ae   :  { %p1018_p1 = scmp.ne.s32.totalorder %s1227_s10, %s1017_s0  ;;  %p1021_p2 = scmp.lt.u32.totalorder %s1017_s0, %s1227_s10 }
 0x3b0   :  { %p1023_p3 = pnand %p1021_p2, %p1018_p1 }
 0x3b2   :  { %1026 = shalt.err (!%p1023_p3)
}
 0x3b3   :  { %745 = dma.vmem_to_hbm [thread:$0]  %s743_s4, 16, %s1227_s10, [#allocation7]  }
 0x3b4   :  { %1035 = dma.done.wait [#allocation7], 16  }
 0x3b5   :  { %1036 = vsyncadd [#allocation7], 4294967280 }
 0x3b6   :  { %749 = vsyncpa [#allocation6], 1 }
 0x3b7   :  { %750 = vsyncpa [#allocation9], 1 }
 0x3b8   :  { %751 = vsyncpa [#allocation7], 1 }
 0x3b9   :  { %752 = vsyncmov [#allocation4] }
 0x3bc   :  { %s753_s20 = vpop.sfrf %752 }
 0x3bd   :  { %p806_p4 = scmp.ne.s32.totalorder %s753_s20, 0 }
 0x3bf   :  { %757 = shalt.err (%p806_p4)  }
 0x3c0   :  { %759 = vsyncmov [#allocation4 + $0x1] }
 0x3c3   :  { %s760_s21 = vpop.sfrf %759 }
 0x3c4   :  { %p807_p5 = scmp.ne.s32.totalorder %s760_s21, 0 }
 0x3c6   :  { %764 = shalt.err (%p807_p5)  }

</bundles_post_ra>
